<compile_context>
chip_gen: v7x
topology: tpu7x:2x2x1
jax: 0.10.0
libtpu: 0.0.40
codegen_flags: <defaults>
</compile_context>

<pallas_src>
import functools

import jax
import jax.numpy as jnp
from jax.experimental import pallas as pl
from jax.experimental.pallas import tpu as pltpu


def _convout_kernel(x_ref, w_ref, b_ref, o_ref):
    # x_ref: (1, Cin, T)  w_ref: (Cout, Cin)  b_ref: (Cout, 1)  o_ref: (1, Cout, T)
    x = x_ref[0]          # (Cin, T)
    w = w_ref[...]        # (Cout, Cin)
    cin, t = x.shape
    cout = w.shape[0]

    # Seed the accumulator with the bias, broadcast once over the lane dim.
    acc = jnp.broadcast_to(b_ref[...], (cout, t)).astype(jnp.float32)

    # Unrolled VPU multiply-add over the (tiny, static) Cin dimension:
    #   acc[o, :] += w[o, c] * x[c, :]
    for c in range(cin):
        acc = acc + w[:, c:c + 1].astype(jnp.float32) * x[c:c + 1, :].astype(jnp.float32)

    # Sigmoid: 1 / (1 + exp(-acc)); exp rides the EUP, reciprocal via pl.reciprocal.
    o_ref[0] = pl.reciprocal(1.0 + jnp.exp(-acc), approx=False).astype(o_ref.dtype)


def _round_up(x, m):
    return ((x + m - 1) // m) * m


@functools.partial(jax.jit, static_argnames=("tile_hw",))
def conv_out_forward(x_nchw, weight, bias, *, tile_hw=2048):
    """1x1 conv + sigmoid, NCHW in / NCHW out.

    x_nchw: (N, Cin, H, W) float32
    weight: (Cout, Cin)    float32   (squeezed 1x1 conv kernel)
    bias:   (Cout,)        float32
    returns (N, Cout, H, W) float32
    """
    N, Cin, H, W = x_nchw.shape
    Cout = weight.shape[0]
    HW = H * W

    # NCHW-native: just flatten spatial, no transpose.
    x_rows = x_nchw.reshape(N, Cin, HW)

    # Lane-dense spatial tile: multiple of 128, capped by the (padded) spatial
    # extent; pad the spatial axis so the tile divides it evenly.
    t = min(tile_hw, _round_up(HW, 128))
    t = _round_up(t, 128)
    HW_pad = _round_up(HW, t)
    if HW_pad != HW:
        x_rows = jnp.pad(x_rows, ((0, 0), (0, 0), (0, HW_pad - HW)))

    b_mat = bias.reshape(Cout, 1)

    grid = (N, HW_pad // t)

    out = pl.pallas_call(
        _convout_kernel,
        out_shape=jax.ShapeDtypeStruct((N, Cout, HW_pad), x_nchw.dtype),
        grid_spec=pltpu.PrefetchScalarGridSpec(
            num_scalar_prefetch=0,
            grid=grid,
            in_specs=[
                pl.BlockSpec((1, Cin, t), lambda b, s: (b, 0, s)),
                pl.BlockSpec((Cout, Cin), lambda b, s: (0, 0)),
                pl.BlockSpec((Cout, 1), lambda b, s: (0, 0)),
            ],
            out_specs=pl.BlockSpec((1, Cout, t), lambda b, s: (b, 0, s)),
        ),
        compiler_params=pltpu.CompilerParams(
            dimension_semantics=("parallel", "parallel"),
            # Blocks are tiny even double-buffered (< 1 MiB at t=2048);
            # 32 MiB is safe on v5e/v6e/v7x and leaves plenty of headroom.
            vmem_limit_bytes=32 * 1024 * 1024,
        ),
    )(x_rows, weight, b_mat)

    if HW_pad != HW:
        out = out[:, :, :HW]
    return out.reshape(N, Cout, H, W)


def init_conv_out_params(key, in_size, out_size):
    """Deterministic init mirroring nn.Conv2d(in_size, out_size, 1) shapes."""
    kw, kb = jax.random.split(key)
    # PyTorch default: U(-1/sqrt(fan_in), 1/sqrt(fan_in)); fan_in = in_size * 1 * 1
    bound = 1.0 / jnp.sqrt(jnp.float32(in_size))
    weight = jax.random.uniform(kw, (out_size, in_size), jnp.float32, -bound, bound)
    bias = jax.random.uniform(kb, (out_size,), jnp.float32, -bound, bound)
    return weight, bias


if __name__ == "__main__":
    key = jax.random.PRNGKey(0)
    k_x, k_p = jax.random.split(key)

    N, Cin, H, W = 2, 4, 16, 16
    Cout = 2

    x = jax.random.normal(k_x, (N, Cin, H, W), jnp.float32)
    weight, bias = init_conv_out_params(k_p, Cin, Cout)

    out = conv_out_forward(x, weight, bias)
    out = jax.block_until_ready(out)

    # Reference check in plain JAX (1x1 conv == einsum over channel dim).
    ref = jax.nn.sigmoid(
        jnp.einsum("nchw,oc->nohw", x, weight) + bias[None, :, None, None]
    )
    assert out.shape == (N, Cout, H, W)
    assert jnp.allclose(out, ref, atol=1e-5, rtol=1e-5)

    print("KERNEL_OK")
</pallas_src>

<mosaic_0001>
module attributes {stable_mosaic.version = 11 : i64} {
  func.func @_convout_kernel(%arg0: i32, %arg1: i32, %arg2: memref<1x4x256xf32, #tpu.memory_space<vmem>>, %arg3: memref<2x4xf32, #tpu.memory_space<vmem>>, %arg4: memref<2x1xf32, #tpu.memory_space<vmem>>, %arg5: memref<1x2x256xf32, #tpu.memory_space<vmem>>) attributes {dimension_semantics = [#tpu.dimension_semantics<parallel>, #tpu.dimension_semantics<parallel>], iteration_bounds = array<i64: 2, 1>, scalar_prefetch = 0 : i64, scratch_operands = 0 : i64, tpu.core_type = #tpu.core_type<tc>, window_params = [{transform_indices = @transform_0, window_bounds = array<i64: 1, 4, 256>}, {pipeline_mode = #tpu.pipeline_mode<synchronous>, transform_indices = @transform_1, window_bounds = array<i64: 2, 4>}, {pipeline_mode = #tpu.pipeline_mode<synchronous>, transform_indices = @transform_2, window_bounds = array<i64: 2, 1>}, {transform_indices = @transform_3, window_bounds = array<i64: 1, 2, 256>}]} {
    %c0 = arith.constant 0 : index
    %c0_0 = arith.constant 0 : index
    %c0_1 = arith.constant 0 : index
    %0 = vector.load %arg2[%c0, %c0_0, %c0_1] : memref<1x4x256xf32, #tpu.memory_space<vmem>>, vector<1x4x256xf32>
    %1 = vector.shape_cast %0 : vector<1x4x256xf32> to vector<4x256xf32>
    %c0_2 = arith.constant 0 : index
    %c0_3 = arith.constant 0 : index
    %2 = vector.load %arg3[%c0_2, %c0_3] : memref<2x4xf32, #tpu.memory_space<vmem>>, vector<2x4xf32>
    %c0_4 = arith.constant 0 : index
    %c0_5 = arith.constant 0 : index
    %3 = vector.load %arg4[%c0_4, %c0_5] : memref<2x1xf32, #tpu.memory_space<vmem>>, vector<2x1xf32>
    %4 = vector.shape_cast %3 : vector<2x1xf32> to vector<2x1xf32>
    %5 = vector.broadcast %4 : vector<2x1xf32> to vector<2x256xf32>
    %6 = vector.extract_strided_slice %2 {offsets = [0, 0], sizes = [2, 1], strides = [1, 1]} : vector<2x4xf32> to vector<2x1xf32>
    %7 = vector.extract_strided_slice %1 {offsets = [0, 0], sizes = [1, 256], strides = [1, 1]} : vector<4x256xf32> to vector<1x256xf32>
    %8 = vector.broadcast %6 : vector<2x1xf32> to vector<2x256xf32>
    %9 = vector.broadcast %7 : vector<1x256xf32> to vector<2x256xf32>
    %10 = arith.mulf %8, %9 : vector<2x256xf32>
    %11 = arith.addf %5, %10 : vector<2x256xf32>
    %12 = vector.extract_strided_slice %2 {offsets = [0, 1], sizes = [2, 1], strides = [1, 1]} : vector<2x4xf32> to vector<2x1xf32>
    %13 = vector.extract_strided_slice %1 {offsets = [1, 0], sizes = [1, 256], strides = [1, 1]} : vector<4x256xf32> to vector<1x256xf32>
    %14 = vector.broadcast %12 : vector<2x1xf32> to vector<2x256xf32>
    %15 = vector.broadcast %13 : vector<1x256xf32> to vector<2x256xf32>
    %16 = arith.mulf %14, %15 : vector<2x256xf32>
    %17 = arith.addf %11, %16 : vector<2x256xf32>
    %18 = vector.extract_strided_slice %2 {offsets = [0, 2], sizes = [2, 1], strides = [1, 1]} : vector<2x4xf32> to vector<2x1xf32>
    %19 = vector.extract_strided_slice %1 {offsets = [2, 0], sizes = [1, 256], strides = [1, 1]} : vector<4x256xf32> to vector<1x256xf32>
    %20 = vector.broadcast %18 : vector<2x1xf32> to vector<2x256xf32>
    %21 = vector.broadcast %19 : vector<1x256xf32> to vector<2x256xf32>
    %22 = arith.mulf %20, %21 : vector<2x256xf32>
    %23 = arith.addf %17, %22 : vector<2x256xf32>
    %24 = vector.extract_strided_slice %2 {offsets = [0, 3], sizes = [2, 1], strides = [1, 1]} : vector<2x4xf32> to vector<2x1xf32>
    %25 = vector.extract_strided_slice %1 {offsets = [3, 0], sizes = [1, 256], strides = [1, 1]} : vector<4x256xf32> to vector<1x256xf32>
    %26 = vector.broadcast %24 : vector<2x1xf32> to vector<2x256xf32>
    %27 = vector.broadcast %25 : vector<1x256xf32> to vector<2x256xf32>
    %28 = arith.mulf %26, %27 : vector<2x256xf32>
    %29 = arith.addf %23, %28 : vector<2x256xf32>
    %cst = arith.constant 0.000000e+00 : f32
    %30 = vector.broadcast %cst : f32 to vector<2x256xf32>
    %31 = arith.subf %30, %29 : vector<2x256xf32>
    %32 = math.exp %31 : vector<2x256xf32>
    %cst_6 = arith.constant 1.000000e+00 : f32
    %33 = vector.broadcast %cst_6 : f32 to vector<2x256xf32>
    %34 = arith.addf %33, %32 : vector<2x256xf32>
    %35 = tpu.reciprocal %34 : vector<2x256xf32> -> vector<2x256xf32>
    %c0_7 = arith.constant 0 : index
    %c0_8 = arith.constant 0 : index
    %c0_9 = arith.constant 0 : index
    %36 = vector.load %arg5[%c0_7, %c0_8, %c0_9] : memref<1x2x256xf32, #tpu.memory_space<vmem>>, vector<1x2x256xf32>
    %37 = vector.shape_cast %36 : vector<1x2x256xf32> to vector<2x256xf32>
    %38 = vector.shape_cast %35 : vector<2x256xf32> to vector<1x2x256xf32>
    tpu.vector_store %arg5[%c0_7, %c0_8, %c0_9], %38 {strides = array<i32>} : memref<1x2x256xf32, #tpu.memory_space<vmem>>, vector<1x2x256xf32>,
    return
  }
  func.func @transform_0(%arg0: i32, %arg1: i32) -> (i32, i32, i32) {
    %c0_i32 = arith.constant 0 : i32
    %c0_i32_0 = arith.constant 0 : i32
    return %arg0, %c0_i32, %arg1 : i32, i32, i32
  }
  func.func @transform_1(%arg0: i32, %arg1: i32) -> (i32, i32) {
    %c0_i32 = arith.constant 0 : i32
    %c0_i32_0 = arith.constant 0 : i32
    %c0_i32_1 = arith.constant 0 : i32
    return %c0_i32, %c0_i32_0 : i32, i32
  }
  func.func @transform_2(%arg0: i32, %arg1: i32) -> (i32, i32) {
    %c0_i32 = arith.constant 0 : i32
    %c0_i32_0 = arith.constant 0 : i32
    %c0_i32_1 = arith.constant 0 : i32
    return %c0_i32, %c0_i32_0 : i32, i32
  }
  func.func @transform_3(%arg0: i32, %arg1: i32) -> (i32, i32, i32) {
    %c0_i32 = arith.constant 0 : i32
    %c0_i32_0 = arith.constant 0 : i32
    return %arg0, %c0_i32, %arg1 : i32, i32, i32
  }
}

</mosaic_0001>

<bundles_post_ra>
// kernel: conv_out_forward.1
= control target key start
LH: loop header
LB: loop body
LE: loop exit
PB: predicated region body
PF: predicated region fallthrough
CT: control target
= control target key end

     0   :  { %s535_s12 = smov 0   ;;  %s537_s13 = smov 0   ;;  %s578_s0 = inlined_call_operand.vmem [shape: f32[2,4,256], index: 0, kind: input, shape index: {}]   ;;  %s579_s1 = inlined_call_operand.vmem [shape: f32[2,4], index: 1, kind: input, shape index: {}]   ;;  %s580_s2 = inlined_call_operand.vmem [shape: f32[2,1], index: 2, kind: input, shape index: {}]   ;;  %s581_s3 = inlined_call_operand.vmem [shape: f32[2,2,256], index: 3, kind: output, shape index: {}]  }
   0x1   :  { %s539_s14 = smov 0  }
   0x2 LB: > { %s25_s15 = sadd.s32 1, %s505_s13  ;;  %p437_p0 = scmp.ge.s32.totalorder %s509_s14, 1  ;;  %s509_s14 = sphi %s539_s14, %s13_s14   ;;  %s505_s13 = sphi %s537_s13, %s583_s13   ;;  %s501_s12 = sphi %s535_s12, %s582_s12  }
   0x3   : > { %p27_p1 = scmp.ge.s32.totalorder %s25_s15, 2  ;;  %p158_p2 = scmp.lt.s32.totalorder %s509_s14, 3 }
   0x5   : > { %s585_s15 = smov (%p27_p1, %s25_s15), 0  ;;  %p159_p3 = pnand %p437_p0, %p158_p2 }
   0x6   : > { %v211_v0 = vld [vmem:[%s579_s1] sm:$0x3] (!%p159_p3)  ;;  %v511_v1 = vmov (!%p159_p3), 0   ;;  %v512_v2 = vmov (!%p159_p3), 1   ;;  %v513_v4 = vmov (!%p159_p3), 2   ;;  %v514_v5 = vmov (!%p159_p3), 3  }
   0x7   : > { %162 = sbr.rel (%p159_p3) target bundleno = 181 (0xb5), region = 32  ;;  %475 = vset.pattern.permute.xlu0 (!%p159_p3), %v511_v1  ;;  %476 = vset.pattern.permute.xlu1 (!%p159_p3), %v512_v2  ;;  %v212_v3 = vld [vmem:[%s580_s2] sm:$0x3] (!%p159_p3)  ;;  %p191_p4 = scmp.lt.s32.totalorder (!%p159_p3), %s501_s12, 1  ;;  %v224_v6 = vlaneseq (!%p159_p3) }
   0x8   : > { %220 = vperm.xlu0 (!%p159_p3), %475, %v211_v0   ;;  %247 = vperm.xlu1 (!%p159_p3), %476, %v211_v0  }
   0x9   : > { %v225_v7 = vshrl.u32 (!%p159_p3), %v224_v6, 7 }
   0xb   : > { %v226_v8 = vsub.s32 (!%p159_p3), 0, %v225_v7  ;;  %v230_v9 = vsub.s32 (!%p159_p3), 4, %v225_v7  ;;  %v252_v11 = vsub.s32 (!%p159_p3), 1, %v225_v7  ;;  %v256_v12 = vsub.s32 (!%p159_p3), 5, %v225_v7 }
   0xc   : > { %215 = vperm.xlu0 (!%p159_p3), %475, %v212_v3   ;;  %477 = vset.pattern.permute.xlu1 (!%p159_p3), %v513_v4  ;;  %v278_v13 = vsub.s32 (!%p159_p3), 2, %v225_v7  ;;  %v282_v14 = vsub.s32 (!%p159_p3), 6, %v225_v7  ;;  %v304_v21 = vsub.s32 (!%p159_p3), 3, %v225_v7  ;;  %v308_v22 = vsub.s32 (!%p159_p3), 7, %v225_v7 }
   0xd   : > { %273 = vperm.xlu1 (!%p159_p3), %477, %v211_v0  }
   0xe   : > { %s587_s12 = smov (!%p191_p4, %s501_s12), 1 }
   0xf   : > { %s445_s20 = sshll.u32 %s587_s12, 3  ;;  %s446_s24 = sshll.u32 %s587_s12, 2 }
  0x10   : > { %478 = vset.pattern.permute.xlu0 %v514_v5  ;;  %s198_s23 = scalar_lea.vmem %s578_s0, %s445_s20  ;;  %s208_s27 = scalar_lea.vmem %s581_s3, %s446_s24 }
  0x11   : > { %299 = vperm.xlu0 %478, %v211_v0   ;;  %v210_v10 = vld [vmem:[%s198_s23] sm:$0xff] }
  0x12   : > { %v227_v15 = vrot.slane %v210_v10, %v226_v8  ;;  %v231_v16 = vrot.slane %v210_v10, %v230_v9  ;;  %v253_v17 = vrot.slane %v210_v10, %v252_v11  ;;  %v257_v18 = vrot.slane %v210_v10, %v256_v12 }
  0x13   : > { %v279_v19 = vrot.slane %v210_v10, %v278_v13  ;;  %v283_v20 = vrot.slane %v210_v10, %v282_v14  ;;  %v305_v31 = vrot.slane %v210_v10, %v304_v21  ;;  %v309_v32 = vrot.slane %v210_v10, %v308_v22 }
  0x14   : > { %v237_v23 = vrot.slane %v227_v15, %v226_v8  ;;  %v241_v24 = vrot.slane %v231_v16, %v226_v8  ;;  %v263_v27 = vrot.slane %v253_v17, %v252_v11  ;;  %v267_v28 = vrot.slane %v257_v18, %v252_v11 }
  0x15   : > { %v289_v29 = vrot.slane %v279_v19, %v278_v13  ;;  %v293_v30 = vrot.slane %v283_v20, %v278_v13  ;;  %v315_v43 = vrot.slane %v305_v31, %v304_v21  ;;  %v319_v44 = vrot.slane %v309_v32, %v304_v21 }
  0x87   : > { %v221_v25 = vpop.permute.xlu0 %220  ;;  %v248_v26 = vpop.permute.xlu1 %247 }
  0x88   : > { %v242_v33 = vmul.f32 %v237_v23, %v221_v25  ;;  %v243_v34 = vmul.f32 %v241_v24, %v221_v25  ;;  %v268_v36 = vmul.f32 %v263_v27, %v248_v26  ;;  %v269_v37 = vmul.f32 %v267_v28, %v248_v26 }
  0x8b   : > { %v216_v35 = vpop.permute.xlu0 %215 }
  0x8c   : > { %v244_v38 = vadd.f32 %v242_v33, %v216_v35  ;;  %v245_v39 = vadd.f32 %v243_v34, %v216_v35  ;;  %v274_v40 = vpop.permute.xlu1 %273 }
  0x8d   : > { %v294_v41 = vmul.f32 %v289_v29, %v274_v40  ;;  %v295_v42 = vmul.f32 %v293_v30, %v274_v40 }
  0x8e   : > { %v270_v45 = vadd.f32 %v268_v36, %v244_v38  ;;  %v271_v46 = vadd.f32 %v269_v37, %v245_v39 }
  0x90   : > { %v296_v47 = vadd.f32 %v294_v41, %v270_v45  ;;  %v297_v48 = vadd.f32 %v295_v42, %v271_v46  ;;  %v300_v49 = vpop.permute.xlu0 %299 }
  0x91   : > { %v320_v50 = vmul.f32 %v315_v43, %v300_v49  ;;  %v321_v51 = vmul.f32 %v319_v44, %v300_v49 }
  0x93   : > { %v322_v52 = vadd.f32 %v320_v50, %v296_v47  ;;  %v323_v53 = vadd.f32 %v321_v51, %v297_v48 }
  0x95   : > { %v324_v54 = vsub.f32 0.0, %v322_v52  ;;  %v325_v55 = vsub.f32 0.0, %v323_v53 }
  0x97   : > { %v326_v56 = vmul.f32 1.442695, %v324_v54  ;;  %v328_v57 = vmul.f32 1.442695, %v325_v55 }
  0x99   : > { %479 = vpow2.f32 %v326_v56 }
  0x9a   : > { %481 = vpow2.f32 %v328_v57 }
  0xa3   : > { %v480_v58 = vpop.eup %479 }
  0xa4   : > { %v482_v59 = vpop.eup %481  ;;  %v330_v60 = vadd.f32 1.0, %v480_v58 }
  0xa5   : > { %v331_v61 = vadd.f32 1.0, %v482_v59 }
  0xa6   : > { %483 = vrcp.f32 %v330_v60 }
  0xa7   : > { %485 = vrcp.f32 %v331_v61 }
  0xb0   : > { %v484_v62 = vpop.eup %483 }
  0xb1   : > { %v486_v63 = vpop.eup %485 }
  0xb2   : > { %v336_v0 = vcombine.low %v484_v62, %v486_v63 }
  0xb4   : > { %442 = vst.sshfl [vmem:[%s208_s27] sm:$0x33 pattern:$0x76325410] %v336_v0 }
  0xb5 PF: > { %s13_s14 = sadd.s32 1, %s509_s14   ;;  %s582_s12 = smov %s505_s13 }
  0xb6   : > { %p10_p5 = scmp.ge.s32.totalorder %s13_s14, 4   ;;  %s583_s13 = smov %s585_s15 }
  0xb8   :  { %12 = sbr.rel (!%p10_p5) target bundleno = 2 (0x2), region = 62 }

</bundles_post_ra>
